<compile_context>
chip_gen: v6e
topology: v6e:2x2x1
jax: 0.10.0
libtpu: 0.0.40
codegen_flags: <defaults>
</compile_context>

<pallas_src>
from functools import partial

import jax
import jax.numpy as jnp
import numpy as np
from jax import lax
from jax.experimental import pallas as pl
from jax.experimental.pallas import tpu as pltpu

LANES = 128


# ---------------------------------------------------------------------------
# Fused kernel: K-step AirGC propagation + flatten-folded MLP + log_softmax
# ---------------------------------------------------------------------------
def airgc_fused_kernel(a_ref, x0_ref, p_ref, o_ref, *, K, lambda_amp, layout):
    gamma = 1.0 / (2.0 * (1.0 - lambda_amp))
    lam = gamma * lambda_amp

    A = a_ref[...]                      # [N, N] normalized adjacency (dense)
    hh = x0_ref[...]                    # [N, F]
    n, f_dim = hh.shape
    num_graphs = o_ref.shape[0]

    # --- K steps of adaptive message passing (amp_forward, 'AirGC' mode) ---
    # y = x - gamma*2*(1-lambda)*(x - A@x) == A@x  (gamma*2*(1-lambda) == 1)
    # x = hh + prox_L21(y - hh, gamma*lambda); prox via rsqrt (EUP slot).
    x = hh
    for _ in range(K):                  # K=3 -> full unroll is fine
        y = jnp.dot(A, x, preferred_element_type=jnp.float32)
        z = y - hh
        rn2 = jnp.sum(z * z, axis=1, keepdims=True)           # ||z||^2 per row
        coef = jnp.maximum(1.0 - lam * lax.rsqrt(rn2 + 1e-30), 0.0)
        x = hh + coef * z

    # --- Flatten [N,F]->[G,F*F] fused into Linear-1 (no reshape, no masked
    #     sub-slab stores):
    #       T[r,:] = sum_j x[r,j] * Wstack[j*N + r, :]
    #       h1     = relu(Q @ T + b1)
    #     with Wstack[j*N+r,:] = w1_folded[(r%F)*F + j, :] and Q[g,r]=[r//F==g],
    #     both precomputed on the host (lane width padded to 128). ---
    wst = layout["wstack"]
    T = jnp.zeros((n, LANES), jnp.float32)
    for j in range(f_dim):              # F=8 lane-dense VPU FMAs on [N,128]
        wj = p_ref[wst + j * n: wst + (j + 1) * n, :]
        T = T + x[:, j:j + 1] * wj

    q = p_ref[layout["q"]: layout["q"] + num_graphs, 0:n]        # [G, N]
    b1 = p_ref[layout["b1"]: layout["b1"] + 1, :]
    h = jnp.maximum(jnp.dot(q, T, preferred_element_type=jnp.float32) + b1, 0.0)

    # --- MLP (eval BNs folded; every dim zero-padded to 128 lanes on host) ---
    w2 = p_ref[layout["w2"]: layout["w2"] + LANES, :]
    b2 = p_ref[layout["b2"]: layout["b2"] + 1, :]
    h = jnp.maximum(jnp.dot(h, w2, preferred_element_type=jnp.float32) + b2, 0.0)

    w3 = p_ref[layout["w3"]: layout["w3"] + LANES, :]
    b3 = p_ref[layout["b3"]: layout["b3"] + 1, :]
    h = jnp.maximum(jnp.dot(h, w3, preferred_element_type=jnp.float32) + b3, 0.0)

    w4 = p_ref[layout["w4"]: layout["w4"] + LANES, :]
    b4 = p_ref[layout["b4"]: layout["b4"] + 1, :]     # padded classes = -1e30
    logits = jnp.dot(h, w4, preferred_element_type=jnp.float32) + b4

    # --- log_softmax over dim=1 (padded lanes contribute exp(-1e30) == 0) ---
    m = jnp.max(logits, axis=1, keepdims=True)
    lse = m + jnp.log(jnp.sum(jnp.exp(logits - m), axis=1, keepdims=True))
    o_ref[...] = logits - lse           # single lane-dense [G,128] store


def airgc_forward(a_hat, x, packed, layout, *, K, lambda_amp, num_graphs, num_classes):
    assert x.shape[0] == num_graphs * x.shape[1], \
        "AirGC flatten assumes nodes-per-graph == num_features"
    out = pl.pallas_call(
        partial(airgc_fused_kernel, K=K, lambda_amp=lambda_amp, layout=layout),
        out_shape=jax.ShapeDtypeStruct((num_graphs, LANES), jnp.float32),
        in_specs=[pl.BlockSpec(memory_space=pltpu.MemorySpace.VMEM)] * 3,
        out_specs=pl.BlockSpec(memory_space=pltpu.MemorySpace.VMEM),
    )(a_hat, x, packed)
    return out[:, :num_classes]         # drop the -inf-like padded classes


# ---------------------------------------------------------------------------
# Host-side parameter construction, BN folding, packing, graph norm, reference
# ---------------------------------------------------------------------------
def make_raw_params(key, in_dim, hidden, num_classes):
    ks = iter(jax.random.split(key, 24))

    def bn(dim):
        g = 1.0 + 0.05 * jax.random.normal(next(ks), (dim,), jnp.float32)
        b = 0.05 * jax.random.normal(next(ks), (dim,), jnp.float32)
        rm = 0.05 * jax.random.normal(next(ks), (dim,), jnp.float32)
        rv = 1.0 + 0.05 * jnp.abs(jax.random.normal(next(ks), (dim,), jnp.float32))
        return (g, b, rm, rv)

    def lin(din, dout):
        w = 0.1 * jax.random.normal(next(ks), (din, dout), jnp.float32)
        b = 0.05 * jax.random.normal(next(ks), (1, dout), jnp.float32)
        return (w, b)

    return dict(
        bn0=bn(in_dim),
        lin1=lin(in_dim, hidden), bn1=bn(hidden),
        lin2=lin(hidden, hidden // 2), bn2=bn(hidden // 2),
        lin3=lin(hidden // 2, hidden // 2), bn3=bn(hidden // 2),
        lin4=lin(hidden // 2, num_classes),
    )


def _bn_scale_shift(bn, eps=1e-5):
    g, b, rm, rv = bn
    scale = g / jnp.sqrt(rv + eps)
    shift = b - rm * scale
    return scale, shift


def fold_params(raw):
    """Exact refactor: fold eval-mode BNs into the adjacent Linear layers."""
    s0, t0 = _bn_scale_shift(raw["bn0"])
    s1, t1 = _bn_scale_shift(raw["bn1"])
    s2, t2 = _bn_scale_shift(raw["bn2"])
    s3, t3 = _bn_scale_shift(raw["bn3"])
    w1, b1 = raw["lin1"]
    w2, b2 = raw["lin2"]
    w3, b3 = raw["lin3"]
    w4, b4 = raw["lin4"]

    w1f = (s0[:, None] * w1) * s1[None, :]
    b1f = (b1 + t0[None, :] @ w1) * s1[None, :] + t1[None, :]
    w2f = w2 * s2[None, :]
    b2f = b2 * s2[None, :] + t2[None, :]
    w3f = w3 * s3[None, :]
    b3f = b3 * s3[None, :] + t3[None, :]
    return (w1f, b1f, w2f, b2f, w3f, b3f, w4, b4)


def pack_params(fused, *, f_dim, num_graphs, num_classes):
    """Pack all (BN-folded, lane-padded) params into one [rows,128] f32 buffer.

    Segments (each 8-row aligned, 128 lanes):
      q      [G,N]      graph-sum selection matrix
      wstack [F*N,H]    Wstack[j*N+r,:] = w1f[(r%F)*F + j, :]  (flatten folded in)
      b1/w2/b2/w3/b3/w4 zero-padded; b4 padded with -1e30 beyond num_classes.
    Returns (packed_array, {name: row_offset}).
    """
    w1f, b1f, w2f, b2f, w3f, b3f, w4, b4 = fused
    n = num_graphs * f_dim
    h1 = w1f.shape[1]

    segs, offs = [], {}

    def add(name, arr, rows=None, fill=0.0):
        r = arr.shape[0] if rows is None else rows
        r = -(-r // 8) * 8                                   # round up to 8 sublanes
        buf = jnp.full((r, LANES), fill, jnp.float32)
        buf = buf.at[:arr.shape[0], :arr.shape[1]].set(arr.astype(jnp.float32))
        offs[name] = sum(int(s.shape[0]) for s in segs)
        segs.append(buf)

    # Q[g, r] = 1 iff r // F == g  (per-graph row sum)
    q = (jnp.arange(n)[None, :] // f_dim == jnp.arange(num_graphs)[:, None]).astype(jnp.float32)
    add("q", q)

    # Wstack[j*N + r, :] = w1f[(r % F)*F + j, :]
    w1r = w1f.reshape(f_dim, f_dim, h1)                      # [i, j, h]
    wnode = jnp.tile(w1r, (num_graphs, 1, 1))                # [r = g*F+i, j, h]
    wstack = jnp.transpose(wnode, (1, 0, 2)).reshape(f_dim * n, h1)
    add("wstack", wstack)

    add("b1", b1f)
    add("w2", w2f, rows=LANES)       # contraction dim padded to 128 (zero rows)
    add("b2", b2f)
    add("w3", w3f, rows=LANES)
    add("b3", b3f)
    add("w4", w4, rows=LANES)        # padded class columns are zero
    add("b4", b4, fill=-1e30)        # padded class logits -> -1e30 (exact log_softmax)

    return jnp.concatenate(segs, axis=0), offs


def gcn_norm_dense(adj):
    n = adj.shape[0]
    a1 = adj + jnp.eye(n, dtype=adj.dtype)                   # add self loops
    deg = jnp.sum(a1, axis=1)
    dinv = jnp.where(deg > 0, 1.0 / jnp.sqrt(deg), 0.0)
    return a1 * dinv[:, None] * dinv[None, :]


def reference_forward(a_hat, x, raw, *, K, lambda_amp, num_graphs, eps=1e-5):
    """Plain-JAX reference with the ORIGINAL (un-folded, sqrt-based) math."""
    lam = (1.0 / (2.0 * (1.0 - lambda_amp))) * lambda_amp
    hh = x
    for _ in range(K):
        y = a_hat @ x
        z = y - hh
        rn = jnp.sqrt(jnp.sum(z * z, axis=1, keepdims=True))
        score = jnp.maximum(rn - lam, 0.0)
        score = jnp.where(rn > 0.0, score / jnp.maximum(rn, 1e-30), score)
        x = hh + score * z
    h = x.reshape(num_graphs, x.shape[1], -1).reshape(num_graphs, -1)

    def bn(v, p):
        g, b, rm, rv = p
        return (v - rm) / jnp.sqrt(rv + eps) * g + b

    w1, b1 = raw["lin1"]
    w2, b2 = raw["lin2"]
    w3, b3 = raw["lin3"]
    w4, b4 = raw["lin4"]
    h = bn(h, raw["bn0"])
    h = jnp.maximum(bn(h @ w1 + b1, raw["bn1"]), 0.0)
    h = jnp.maximum(bn(h @ w2 + b2, raw["bn2"]), 0.0)
    h = jnp.maximum(bn(h @ w3 + b3, raw["bn3"]), 0.0)
    logits = h @ w4 + b4
    return jax.nn.log_softmax(logits, axis=1)


if __name__ == "__main__":
    # Module-consistent small shapes:
    #   num_features F = 8, num_graphs G = 2, nodes per graph = F -> N = 16
    #   hidden = 32, num_classes = 4, K = 3, lambda_amp = 0.5
    F_DIM, G, H, C, K, LAMBDA = 8, 2, 32, 4, 3, 0.5
    N = G * F_DIM
    IN_DIM = F_DIM * F_DIM

    key = jax.random.PRNGKey(0)
    k_x, k_a, k_p = jax.random.split(key, 3)

    # Node features [N, F]
    x = jax.random.normal(k_x, (N, F_DIM), jnp.float32)

    # Random symmetric adjacency (no self loops), then gcn_norm with self loops.
    rnd = jax.random.uniform(k_a, (N, N))
    adj = (rnd < 0.3).astype(jnp.float32)
    adj = jnp.maximum(adj, adj.T) * (1.0 - jnp.eye(N, dtype=jnp.float32))
    a_hat = gcn_norm_dense(adj)

    raw_params = make_raw_params(k_p, IN_DIM, H, C)
    fused = fold_params(raw_params)
    packed, layout = pack_params(fused, f_dim=F_DIM, num_graphs=G, num_classes=C)

    # --- Pallas (single fused kernel, 3 input DMAs, lane-dense output) ---
    out = airgc_forward(a_hat, x, packed, layout, K=K, lambda_amp=LAMBDA,
                        num_graphs=G, num_classes=C)
    out = jax.block_until_ready(out)

    # --- Reference check (plain JAX, original math, full-precision matmuls) ---
    with jax.default_matmul_precision("highest"):
        ref = jax.block_until_ready(
            reference_forward(a_hat, x, raw_params, K=K, lambda_amp=LAMBDA, num_graphs=G)
        )
    np.testing.assert_allclose(np.asarray(out), np.asarray(ref), rtol=1e-2, atol=1e-2)

    print("KERNEL_OK")
</pallas_src>

<mosaic_0001>
module attributes {stable_mosaic.version = 11 : i64} {
  func.func @airgc_fused_kernel(%arg0: memref<16x16xf32, #tpu.memory_space<vmem>>, %arg1: memref<16x8xf32, #tpu.memory_space<vmem>>, %arg2: memref<552x128xf32, #tpu.memory_space<vmem>>, %arg3: memref<2x128xf32, #tpu.memory_space<vmem>>) attributes {dimension_semantics = [], scalar_prefetch = 0 : i64, scratch_operands = 0 : i64, tpu.core_type = #tpu.core_type<tc>} {
    %c0 = arith.constant 0 : index
    %c0_0 = arith.constant 0 : index
    %0 = vector.load %arg0[%c0, %c0_0] : memref<16x16xf32, #tpu.memory_space<vmem>>, vector<16x16xf32>
    %c0_1 = arith.constant 0 : index
    %c0_2 = arith.constant 0 : index
    %1 = vector.load %arg1[%c0_1, %c0_2] : memref<16x8xf32, #tpu.memory_space<vmem>>, vector<16x8xf32>
    %cst = arith.constant dense<0.000000e+00> : vector<16x8xf32>
    %2 = tpu.matmul %0, %1, %cst {dimension_numbers = #tpu.dot_dimension_numbers<[1], [0], [0], [1], [0, 0, 1, 1], [], []>} : vector<16x16xf32>, vector<16x8xf32>, vector<16x8xf32> -> vector<16x8xf32>
    %3 = arith.subf %2, %1 : vector<16x8xf32>
    %4 = arith.mulf %3, %3 : vector<16x8xf32>
    %cst_3 = arith.constant dense<0.000000e+00> : vector<16xf32>
    %5 = vector.multi_reduction <add>, %4, %cst_3 [1] : vector<16x8xf32> to vector<16xf32>
    %6 = vector.shape_cast %5 : vector<16xf32> to vector<16x1xf32>
    %cst_4 = arith.constant 1.000000e-30 : f32
    %7 = vector.broadcast %cst_4 : f32 to vector<16x1xf32>
    %8 = arith.addf %6, %7 : vector<16x1xf32>
    %9 = math.rsqrt %8 : vector<16x1xf32>
    %cst_5 = arith.constant 5.000000e-01 : f32
    %10 = vector.broadcast %cst_5 : f32 to vector<16x1xf32>
    %11 = arith.mulf %10, %9 : vector<16x1xf32>
    %cst_6 = arith.constant 1.000000e+00 : f32
    %12 = vector.broadcast %cst_6 : f32 to vector<16x1xf32>
    %13 = arith.subf %12, %11 : vector<16x1xf32>
    %cst_7 = arith.constant 0.000000e+00 : f32
    %14 = vector.broadcast %cst_7 : f32 to vector<16x1xf32>
    %15 = arith.maximumf %13, %14 : vector<16x1xf32>
    %16 = vector.broadcast %15 : vector<16x1xf32> to vector<16x8xf32>
    %17 = arith.mulf %16, %3 : vector<16x8xf32>
    %18 = arith.addf %1, %17 : vector<16x8xf32>
    %cst_8 = arith.constant dense<0.000000e+00> : vector<16x8xf32>
    %19 = tpu.matmul %0, %18, %cst_8 {dimension_numbers = #tpu.dot_dimension_numbers<[1], [0], [0], [1], [0, 0, 1, 1], [], []>} : vector<16x16xf32>, vector<16x8xf32>, vector<16x8xf32> -> vector<16x8xf32>
    %20 = arith.subf %19, %1 : vector<16x8xf32>
    %21 = arith.mulf %20, %20 : vector<16x8xf32>
    %cst_9 = arith.constant dense<0.000000e+00> : vector<16xf32>
    %22 = vector.multi_reduction <add>, %21, %cst_9 [1] : vector<16x8xf32> to vector<16xf32>
    %23 = vector.shape_cast %22 : vector<16xf32> to vector<16x1xf32>
    %cst_10 = arith.constant 1.000000e-30 : f32
    %24 = vector.broadcast %cst_10 : f32 to vector<16x1xf32>
    %25 = arith.addf %23, %24 : vector<16x1xf32>
    %26 = math.rsqrt %25 : vector<16x1xf32>
    %cst_11 = arith.constant 5.000000e-01 : f32
    %27 = vector.broadcast %cst_11 : f32 to vector<16x1xf32>
    %28 = arith.mulf %27, %26 : vector<16x1xf32>
    %cst_12 = arith.constant 1.000000e+00 : f32
    %29 = vector.broadcast %cst_12 : f32 to vector<16x1xf32>
    %30 = arith.subf %29, %28 : vector<16x1xf32>
    %cst_13 = arith.constant 0.000000e+00 : f32
    %31 = vector.broadcast %cst_13 : f32 to vector<16x1xf32>
    %32 = arith.maximumf %30, %31 : vector<16x1xf32>
    %33 = vector.broadcast %32 : vector<16x1xf32> to vector<16x8xf32>
    %34 = arith.mulf %33, %20 : vector<16x8xf32>
    %35 = arith.addf %1, %34 : vector<16x8xf32>
    %cst_14 = arith.constant dense<0.000000e+00> : vector<16x8xf32>
    %36 = tpu.matmul %0, %35, %cst_14 {dimension_numbers = #tpu.dot_dimension_numbers<[1], [0], [0], [1], [0, 0, 1, 1], [], []>} : vector<16x16xf32>, vector<16x8xf32>, vector<16x8xf32> -> vector<16x8xf32>
    %37 = arith.subf %36, %1 : vector<16x8xf32>
    %38 = arith.mulf %37, %37 : vector<16x8xf32>
    %cst_15 = arith.constant dense<0.000000e+00> : vector<16xf32>
    %39 = vector.multi_reduction <add>, %38, %cst_15 [1] : vector<16x8xf32> to vector<16xf32>
    %40 = vector.shape_cast %39 : vector<16xf32> to vector<16x1xf32>
    %cst_16 = arith.constant 1.000000e-30 : f32
    %41 = vector.broadcast %cst_16 : f32 to vector<16x1xf32>
    %42 = arith.addf %40, %41 : vector<16x1xf32>
    %43 = math.rsqrt %42 : vector<16x1xf32>
    %cst_17 = arith.constant 5.000000e-01 : f32
    %44 = vector.broadcast %cst_17 : f32 to vector<16x1xf32>
    %45 = arith.mulf %44, %43 : vector<16x1xf32>
    %cst_18 = arith.constant 1.000000e+00 : f32
    %46 = vector.broadcast %cst_18 : f32 to vector<16x1xf32>
    %47 = arith.subf %46, %45 : vector<16x1xf32>
    %cst_19 = arith.constant 0.000000e+00 : f32
    %48 = vector.broadcast %cst_19 : f32 to vector<16x1xf32>
    %49 = arith.maximumf %47, %48 : vector<16x1xf32>
    %50 = vector.broadcast %49 : vector<16x1xf32> to vector<16x8xf32>
    %51 = arith.mulf %50, %37 : vector<16x8xf32>
    %52 = arith.addf %1, %51 : vector<16x8xf32>
    %cst_20 = arith.constant 0.000000e+00 : f32
    %53 = vector.broadcast %cst_20 : f32 to vector<16x128xf32>
    %c8 = arith.constant 8 : index
    %c0_21 = arith.constant 0 : index
    %54 = vector.load %arg2[%c8, %c0_21] : memref<552x128xf32, #tpu.memory_space<vmem>>, vector<16x128xf32>
    %55 = vector.extract_strided_slice %52 {offsets = [0, 0], sizes = [16, 1], strides = [1, 1]} : vector<16x8xf32> to vector<16x1xf32>
    %56 = vector.broadcast %55 : vector<16x1xf32> to vector<16x128xf32>
    %57 = arith.mulf %56, %54 : vector<16x128xf32>
    %58 = arith.addf %53, %57 : vector<16x128xf32>
    %c24 = arith.constant 24 : index
    %c0_22 = arith.constant 0 : index
    %59 = vector.load %arg2[%c24, %c0_22] : memref<552x128xf32, #tpu.memory_space<vmem>>, vector<16x128xf32>
    %60 = vector.extract_strided_slice %52 {offsets = [0, 1], sizes = [16, 1], strides = [1, 1]} : vector<16x8xf32> to vector<16x1xf32>
    %61 = vector.broadcast %60 : vector<16x1xf32> to vector<16x128xf32>
    %62 = arith.mulf %61, %59 : vector<16x128xf32>
    %63 = arith.addf %58, %62 : vector<16x128xf32>
    %c40 = arith.constant 40 : index
    %c0_23 = arith.constant 0 : index
    %64 = vector.load %arg2[%c40, %c0_23] : memref<552x128xf32, #tpu.memory_space<vmem>>, vector<16x128xf32>
    %65 = vector.extract_strided_slice %52 {offsets = [0, 2], sizes = [16, 1], strides = [1, 1]} : vector<16x8xf32> to vector<16x1xf32>
    %66 = vector.broadcast %65 : vector<16x1xf32> to vector<16x128xf32>
    %67 = arith.mulf %66, %64 : vector<16x128xf32>
    %68 = arith.addf %63, %67 : vector<16x128xf32>
    %c56 = arith.constant 56 : index
    %c0_24 = arith.constant 0 : index
    %69 = vector.load %arg2[%c56, %c0_24] : memref<552x128xf32, #tpu.memory_space<vmem>>, vector<16x128xf32>
    %70 = vector.extract_strided_slice %52 {offsets = [0, 3], sizes = [16, 1], strides = [1, 1]} : vector<16x8xf32> to vector<16x1xf32>
    %71 = vector.broadcast %70 : vector<16x1xf32> to vector<16x128xf32>
    %72 = arith.mulf %71, %69 : vector<16x128xf32>
    %73 = arith.addf %68, %72 : vector<16x128xf32>
    %c72 = arith.constant 72 : index
    %c0_25 = arith.constant 0 : index
    %74 = vector.load %arg2[%c72, %c0_25] : memref<552x128xf32, #tpu.memory_space<vmem>>, vector<16x128xf32>
    %75 = vector.extract_strided_slice %52 {offsets = [0, 4], sizes = [16, 1], strides = [1, 1]} : vector<16x8xf32> to vector<16x1xf32>
    %76 = vector.broadcast %75 : vector<16x1xf32> to vector<16x128xf32>
    %77 = arith.mulf %76, %74 : vector<16x128xf32>
    %78 = arith.addf %73, %77 : vector<16x128xf32>
    %c88 = arith.constant 88 : index
    %c0_26 = arith.constant 0 : index
    %79 = vector.load %arg2[%c88, %c0_26] : memref<552x128xf32, #tpu.memory_space<vmem>>, vector<16x128xf32>
    %80 = vector.extract_strided_slice %52 {offsets = [0, 5], sizes = [16, 1], strides = [1, 1]} : vector<16x8xf32> to vector<16x1xf32>
    %81 = vector.broadcast %80 : vector<16x1xf32> to vector<16x128xf32>
    %82 = arith.mulf %81, %79 : vector<16x128xf32>
    %83 = arith.addf %78, %82 : vector<16x128xf32>
    %c104 = arith.constant 104 : index
    %c0_27 = arith.constant 0 : index
    %84 = vector.load %arg2[%c104, %c0_27] : memref<552x128xf32, #tpu.memory_space<vmem>>, vector<16x128xf32>
    %85 = vector.extract_strided_slice %52 {offsets = [0, 6], sizes = [16, 1], strides = [1, 1]} : vector<16x8xf32> to vector<16x1xf32>
    %86 = vector.broadcast %85 : vector<16x1xf32> to vector<16x128xf32>
    %87 = arith.mulf %86, %84 : vector<16x128xf32>
    %88 = arith.addf %83, %87 : vector<16x128xf32>
    %c120 = arith.constant 120 : index
    %c0_28 = arith.constant 0 : index
    %89 = vector.load %arg2[%c120, %c0_28] : memref<552x128xf32, #tpu.memory_space<vmem>>, vector<16x128xf32>
    %90 = vector.extract_strided_slice %52 {offsets = [0, 7], sizes = [16, 1], strides = [1, 1]} : vector<16x8xf32> to vector<16x1xf32>
    %91 = vector.broadcast %90 : vector<16x1xf32> to vector<16x128xf32>
    %92 = arith.mulf %91, %89 : vector<16x128xf32>
    %93 = arith.addf %88, %92 : vector<16x128xf32>
    %c0_29 = arith.constant 0 : index
    %c0_30 = arith.constant 0 : index
    %94 = vector.load %arg2[%c0_29, %c0_30] : memref<552x128xf32, #tpu.memory_space<vmem>>, vector<2x16xf32>
    %c136 = arith.constant 136 : index
    %c0_31 = arith.constant 0 : index
    %95 = vector.load %arg2[%c136, %c0_31] : memref<552x128xf32, #tpu.memory_space<vmem>>, vector<1x128xf32>
    %cst_32 = arith.constant dense<0.000000e+00> : vector<2x128xf32>
    %96 = tpu.matmul %94, %93, %cst_32 {dimension_numbers = #tpu.dot_dimension_numbers<[1], [0], [0], [1], [0, 0, 1, 1], [], []>} : vector<2x16xf32>, vector<16x128xf32>, vector<2x128xf32> -> vector<2x128xf32>
    %97 = vector.broadcast %95 : vector<1x128xf32> to vector<2x128xf32>
    %98 = arith.addf %96, %97 : vector<2x128xf32>
    %cst_33 = arith.constant 0.000000e+00 : f32
    %99 = vector.broadcast %cst_33 : f32 to vector<2x128xf32>
    %100 = arith.maximumf %98, %99 : vector<2x128xf32>
    %c144 = arith.constant 144 : index
    %c0_34 = arith.constant 0 : index
    %101 = vector.load %arg2[%c144, %c0_34] : memref<552x128xf32, #tpu.memory_space<vmem>>, vector<128x128xf32>
    %c272 = arith.constant 272 : index
    %c0_35 = arith.constant 0 : index
    %102 = vector.load %arg2[%c272, %c0_35] : memref<552x128xf32, #tpu.memory_space<vmem>>, vector<1x128xf32>
    %cst_36 = arith.constant dense<0.000000e+00> : vector<2x128xf32>
    %103 = tpu.matmul %100, %101, %cst_36 {dimension_numbers = #tpu.dot_dimension_numbers<[1], [0], [0], [1], [0, 0, 1, 1], [], []>} : vector<2x128xf32>, vector<128x128xf32>, vector<2x128xf32> -> vector<2x128xf32>
    %104 = vector.broadcast %102 : vector<1x128xf32> to vector<2x128xf32>
    %105 = arith.addf %103, %104 : vector<2x128xf32>
    %cst_37 = arith.constant 0.000000e+00 : f32
    %106 = vector.broadcast %cst_37 : f32 to vector<2x128xf32>
    %107 = arith.maximumf %105, %106 : vector<2x128xf32>
    %c280 = arith.constant 280 : index
    %c0_38 = arith.constant 0 : index
    %108 = vector.load %arg2[%c280, %c0_38] : memref<552x128xf32, #tpu.memory_space<vmem>>, vector<128x128xf32>
    %c408 = arith.constant 408 : index
    %c0_39 = arith.constant 0 : index
    %109 = vector.load %arg2[%c408, %c0_39] : memref<552x128xf32, #tpu.memory_space<vmem>>, vector<1x128xf32>
    %cst_40 = arith.constant dense<0.000000e+00> : vector<2x128xf32>
    %110 = tpu.matmul %107, %108, %cst_40 {dimension_numbers = #tpu.dot_dimension_numbers<[1], [0], [0], [1], [0, 0, 1, 1], [], []>} : vector<2x128xf32>, vector<128x128xf32>, vector<2x128xf32> -> vector<2x128xf32>
    %111 = vector.broadcast %109 : vector<1x128xf32> to vector<2x128xf32>
    %112 = arith.addf %110, %111 : vector<2x128xf32>
    %cst_41 = arith.constant 0.000000e+00 : f32
    %113 = vector.broadcast %cst_41 : f32 to vector<2x128xf32>
    %114 = arith.maximumf %112, %113 : vector<2x128xf32>
    %c416 = arith.constant 416 : index
    %c0_42 = arith.constant 0 : index
    %115 = vector.load %arg2[%c416, %c0_42] : memref<552x128xf32, #tpu.memory_space<vmem>>, vector<128x128xf32>
    %c544 = arith.constant 544 : index
    %c0_43 = arith.constant 0 : index
    %116 = vector.load %arg2[%c544, %c0_43] : memref<552x128xf32, #tpu.memory_space<vmem>>, vector<1x128xf32>
    %cst_44 = arith.constant dense<0.000000e+00> : vector<2x128xf32>
    %117 = tpu.matmul %114, %115, %cst_44 {dimension_numbers = #tpu.dot_dimension_numbers<[1], [0], [0], [1], [0, 0, 1, 1], [], []>} : vector<2x128xf32>, vector<128x128xf32>, vector<2x128xf32> -> vector<2x128xf32>
    %118 = vector.broadcast %116 : vector<1x128xf32> to vector<2x128xf32>
    %119 = arith.addf %117, %118 : vector<2x128xf32>
    %cst_45 = arith.constant dense<0xFF800000> : vector<2xf32>
    %120 = vector.multi_reduction <maximumf>, %119, %cst_45 [1] : vector<2x128xf32> to vector<2xf32>
    %121 = vector.shape_cast %120 : vector<2xf32> to vector<2x1xf32>
    %122 = vector.broadcast %121 : vector<2x1xf32> to vector<2x128xf32>
    %123 = arith.subf %119, %122 : vector<2x128xf32>
    %124 = math.exp %123 : vector<2x128xf32>
    %cst_46 = arith.constant dense<0.000000e+00> : vector<2xf32>
    %125 = vector.multi_reduction <add>, %124, %cst_46 [1] : vector<2x128xf32> to vector<2xf32>
    %126 = vector.shape_cast %125 : vector<2xf32> to vector<2x1xf32>
    %127 = math.log %126 : vector<2x1xf32>
    %128 = arith.addf %121, %127 : vector<2x1xf32>
    %129 = vector.broadcast %128 : vector<2x1xf32> to vector<2x128xf32>
    %130 = arith.subf %119, %129 : vector<2x128xf32>
    %c0_47 = arith.constant 0 : index
    %c0_48 = arith.constant 0 : index
    %131 = vector.load %arg3[%c0_47, %c0_48] : memref<2x128xf32, #tpu.memory_space<vmem>>, vector<2x128xf32>
    tpu.vector_store %arg3[%c0_47, %c0_48], %130 {strides = array<i32>} : memref<2x128xf32, #tpu.memory_space<vmem>>, vector<2x128xf32>,
    return
  }
}

</mosaic_0001>

<bundles_post_ra>
// kernel: tpu_custom_call.1
= control target key start
LH: loop header
LB: loop body
LE: loop exit
PB: predicated region body
PF: predicated region fallthrough
CT: control target
= control target key end

     0   :  { %8 = vsyncpa [#allocation3], 0  ;;  %s1285_s0 = inlined_call_operand.vmem [shape: f32[16,16], index: 0, kind: input, shape index: {}]   ;;  %s1286_s1 = inlined_call_operand.vmem [shape: f32[16,8], index: 1, kind: input, shape index: {}]   ;;  %s1287_s2 = inlined_call_operand.hbm [shape: f32[552,128], index: 2, kind: input, shape index: {}]   ;;  %s1288_s3 = inlined_call_operand.hbm [shape: f32[2,128], index: 3, kind: output, shape index: {}]  }
   0x1   :  { %9 = vsyncpa [#allocation4], 0  ;;  %s1137_s12 = smov [#allocation2]  }
   0x2   :  { %s19_s13 = sshll.u32 %s1137_s12, 4  ;;  %s20_s13 = int_to_ptr.vmem [resolvable:$true] %s19_s13 }
   0x3   :  { %s1101_s14 = scalar_lea.vmem %s20_s13, 8832  ;;  %p1106_p1 = scmp.lt.s32.totalorder %s20_s13, %s20_s13 }
   0x4   :  { %p1102_p0 = scmp.ne.s32.totalorder %s20_s13, %s1101_s14  ;;  %p1107_p2 = scmp.lt.s32.totalorder %s1101_s14, %s1101_s14 }
   0x6   :  { %p1108_p3 = por %p1107_p2, %p1106_p1 }
   0x8   :  { %p1109_p4 = pnand %p1108_p3, %p1102_p0 }
   0xa   :  { %1112 = shalt.err (!%p1109_p4)
}
   0xb   :  { %s1138_s15 = smov 128   ;;  %s1139_s16 = smov 8  }
   0xc   :  { %25 = dma.hbm_to_vmem [thread:$0]  %s1287_s2, 8832, %s20_s13, [#allocation3], %s1138_s15, %s1138_s15, %s1139_s16  }
   0xd   :  { %1133 = dma.done.wait [#allocation3], 8832  }
   0xe   :  { %1134 = vsyncadd [#allocation3], 4294958464  ;;  %vm33_vm0 = vcmask 130048   ;;  %v1177_v0 = vld [vmem:[%s1286_s1 + $0x8] sm:$0xff]  ;;  %v1182_v1 = vld [vmem:[%s1286_s1] sm:$0xff]  ;;  %vm119_vm1 = vcmask 64512  }
   0xf   :  { %v29_v2 = vld [vmem:[%s1285_s0] sm:$0xff]  ;;  %914 = vmatprep.subr.mxu1 %v1177_v0  ;;  %v1193_v3 = vld [vmem:[%s1285_s0 + $0x8] sm:$0xff]  ;;  %v1140_v60 = vmov 1   ;;  %v1141_v61 = vmov 0   ;;  %vm1149_vm2 = vmmov 0   ;;  %vm807_vm3 = vcmask 1041408  }
  0x10   :  { %918 = vmatprep.mubr.msk.f32.mxu1 %vm33_vm0, %v29_v2  ;;  %915 = vmatpush3.msra.mxu1 %v1177_v0  ;;  %s1150_s0 = smov [#allocation5]  }
  0x11   :  { %916 = vmatprep.subr.mxu1 %v1182_v1  ;;  %1062 = vset.pattern.permute.xlu1 %v1140_v60  ;;  %s828_s1 = sshll.u32 %s1150_s0, 4  ;;  %s829_s1 = int_to_ptr.vmem [resolvable:$true] %s828_s1 }
  0x12   :  { %917 = vmatpush3.msra.mxu1 %v1182_v1  ;;  %1061 = vset.pattern.permute.xlu0 %v1141_v61  ;;  %s1113_s26 = scalar_lea.vmem %s829_s1, 32  ;;  %p1118_p6 = scmp.lt.s32.totalorder %s829_s1, %s829_s1 }
  0x13   :  { %919 = vmatmul.mubr.msk.f32.vlgmr.msra.gmra.mxu1 %vm33_vm0, %v1193_v3  ;;  %p1114_p5 = scmp.ne.s32.totalorder %s829_s1, %s1113_s26  ;;  %p1119_p7 = scmp.lt.s32.totalorder %s1113_s26, %s1113_s26 }
  0x14   :  { %925 = vmatprep.mubr.msk.f32.mxu1 %vm33_vm0, %v29_v2 }
  0x15   :  { %p1120_p8 = por %p1119_p7, %p1118_p6 }
  0x17   :  { %p1121_p9 = pnand %p1120_p8, %p1114_p5 }
  0xd3   :  { %v920_v4 = vpop.f32.mrf.mxu1 }
  0xd4   :  { %v116_v5 = vsub.f32 %v920_v4, %v1177_v0 }
  0xd5   :  { %v106_v6 = vpop.f32.mrf.mxu1 }
  0xd6   :  { %v115_v7 = vsub.f32 %v106_v6, %v1182_v1  ;;  %v118_v8 = vmul.f32 %v116_v5, %v116_v5 }
  0xd8   :  { %v123_v9 = vsel %vm119_vm1, %v118_v8, 0.0  ;;  %v117_v10 = vmul.f32 %v115_v7, %v115_v7 }
  0xd9   :  { %124 = vadd.xlane.f32.xlu0 %v123_v9 }
  0xda   :  { %v120_v11 = vsel %vm119_vm1, %v117_v10, 0.0 }
  0xdd   :  { %121 = vadd.xlane.f32.xlu0 %v120_v11 }
 0x162   :  { %v125_v12 = vpop.xlane.xlu0 %124 }
 0x163   :  { %v127_v13 = vadd.f32 1e-30, %v125_v12 }
 0x165   :  { %1077 = vrsqrt.f32 %v127_v13 }
 0x166   :  { %v122_v14 = vpop.xlane.xlu0 %121 }
 0x167   :  { %v126_v15 = vadd.f32 1e-30, %v122_v14 }
 0x169   :  { %1079 = vrsqrt.f32 %v126_v15  ;;  %v1142_v15 = vmov 6  }
 0x172   :  { %v1078_v16 = vpop.eup %1077 }
 0x173   :  { %v131_v17 = vmul.f32 0.5, %v1078_v16  ;;  %v1143_v16 = vmov 2  }
 0x175   :  { %v133_v18 = vsub.f32 1.0, %v131_v17 }
 0x176   :  { %v1080_v19 = vpop.eup %1079 }
 0x177   :  { %v135_v20 = vmax.f32 %v133_v18, 0.0  ;;  %v130_v21 = vmul.f32 0.5, %v1080_v19  ;;  %v1144_v18 = vmov 4   ;;  %v1145_v19 = vmov 3  }
 0x179   :  { %v132_v22 = vsub.f32 1.0, %v130_v21  ;;  %v137_v23 = vmul.f32 %v135_v20, %v116_v5  ;;  %v1147_v20 = vmov 5   ;;  %v547_v21 = vld [vmem:[#allocation2 + $0x108] sm:$0xff] }
 0x17b   :  { %v134_v24 = vmax.f32 %v132_v22, 0.0  ;;  %v139_v25 = vadd.f32 %v137_v23, %v1177_v0  ;;  %v546_v22 = vld [vmem:[#allocation2 + $0x100] sm:$0xff]  ;;  %v545_v23 = vld [vmem:[#allocation2 + $0xf8] sm:$0xff] }
 0x17d   :  { %921 = vmatprep.subr.mxu1 %v139_v25  ;;  %v136_v26 = vmul.f32 %v134_v24, %v115_v7  ;;  %v544_v24 = vld [vmem:[#allocation2 + $0xf0] sm:$0xff] }
 0x17e   :  { %922 = vmatpush3.msra.mxu1 %v139_v25  ;;  %v543_v25 = vld [vmem:[#allocation2 + $0xe8] sm:$0xff] }
 0x17f   :  { %v138_v27 = vadd.f32 %v136_v26, %v1182_v1  ;;  %v542_v26 = vld [vmem:[#allocation2 + $0xe0] sm:$0xff] }
 0x181   :  { %923 = vmatprep.subr.mxu1 %v138_v27 }
 0x182   :  { %924 = vmatpush3.msra.mxu1 %v138_v27  ;;  %v541_v27 = vld [vmem:[#allocation2 + $0xd8] sm:$0xff] }
 0x183   :  { %926 = vmatmul.mubr.msk.f32.vlgmr.msra.gmra.mxu1 %vm33_vm0, %v1193_v3 }
 0x184   :  { %932 = vmatprep.mubr.msk.f32.mxu1 %vm33_vm0, %v29_v2 }
 0x243   :  { %v927_v28 = vpop.f32.mrf.mxu1 }
 0x244   :  { %v216_v29 = vsub.f32 %v927_v28, %v1177_v0  ;;  %v540_v28 = vld [vmem:[#allocation2 + $0xd0] sm:$0xff] }
 0x245   :  { %v206_v30 = vpop.f32.mrf.mxu1 }
 0x246   :  { %v215_v31 = vsub.f32 %v206_v30, %v1182_v1  ;;  %v218_v32 = vmul.f32 %v216_v29, %v216_v29  ;;  %v538_v30 = vld [vmem:[#allocation2 + $0xc0] sm:$0xff] }
 0x248   :  { %v222_v33 = vsel %vm119_vm1, %v218_v32, 0.0  ;;  %v217_v34 = vmul.f32 %v215_v31, %v215_v31  ;;  %v536_v32 = vld [vmem:[#allocation2 + $0xb0] sm:$0xff] }
 0x249   :  { %223 = vadd.xlane.f32.xlu1 %v222_v33  ;;  %v535_v33 = vld [vmem:[#allocation2 + $0xa8] sm:$0xff] }
 0x24a   :  { %v219_v35 = vsel %vm119_vm1, %v217_v34, 0.0 }
 0x24d   :  { %220 = vadd.xlane.f32.xlu1 %v219_v35 }
 0x2d2   :  { %v224_v36 = vpop.xlane.xlu1 %223 }
 0x2d3   :  { %v226_v37 = vadd.f32 1e-30, %v224_v36 }
 0x2d5   :  { %1081 = vrsqrt.f32 %v226_v37 }
 0x2d6   :  { %v221_v38 = vpop.xlane.xlu1 %220 }
 0x2d7   :  { %v225_v39 = vadd.f32 1e-30, %v221_v38 }
 0x2d9   :  { %1083 = vrsqrt.f32 %v225_v39 }
 0x2e2   :  { %v1082_v40 = vpop.eup %1081 }
 0x2e3   :  { %v230_v41 = vmul.f32 0.5, %v1082_v40 }
 0x2e5   :  { %v232_v42 = vsub.f32 1.0, %v230_v41 }
 0x2e6   :  { %v1084_v43 = vpop.eup %1083 }
 0x2e7   :  { %v234_v44 = vmax.f32 %v232_v42, 0.0  ;;  %v229_v45 = vmul.f32 0.5, %v1084_v43  ;;  %v354_v42 = vld [vmem:[#allocation2 + $0x18] sm:$0xff] }
 0x2e9   :  { %v231_v46 = vsub.f32 1.0, %v229_v45  ;;  %v236_v47 = vmul.f32 %v234_v44, %v216_v29  ;;  %v539_v29 = vld [vmem:[#allocation2 + $0xc8] sm:$0xff]  ;;  %v339_v44 = vld [vmem:[#allocation2 + $0x10] sm:$0xff]  ;;  %v355_v45 = vld [vmem:[#allocation2 + $0x20] sm:$0xff] }
 0x2eb   :  { %v233_v48 = vmax.f32 %v231_v46, 0.0  ;;  %v238_v49 = vadd.f32 %v236_v47, %v1177_v0  ;;  %v338_v46 = vld [vmem:[#allocation2 + $0x8] sm:$0xff] }
 0x2ec   :  { %v368_v47 = vld [vmem:[#allocation2 + $0x28] sm:$0xff] }
 0x2ed   :  { %928 = vmatprep.subr.mxu1 %v238_v49  ;;  %v235_v50 = vmul.f32 %v233_v48, %v215_v31  ;;  %v537_v31 = vld [vmem:[#allocation2 + $0xb8] sm:$0xff] }
 0x2ee   :  { %929 = vmatpush3.msra.mxu1 %v238_v49 }
 0x2ef   :  { %v237_v51 = vadd.f32 %v235_v50, %v1182_v1  ;;  %v369_v50 = vld [vmem:[#allocation2 + $0x30] sm:$0xff] }
 0x2f1   :  { %930 = vmatprep.subr.mxu1 %v237_v51 }
 0x2f2   :  { %931 = vmatpush3.msra.mxu1 %v237_v51  ;;  %v382_v51 = vld [vmem:[#allocation2 + $0x38] sm:$0xff] }
 0x2f3   :  { %933 = vmatmul.mubr.msk.f32.vlgmr.msra.gmra.mxu1 %vm33_vm0, %v1193_v3 }
 0x3b3   :  { %v934_v52 = vpop.f32.mrf.mxu1 }
 0x3b4   :  { %v315_v53 = vsub.f32 %v934_v52, %v1177_v0 }
 0x3b5   :  { %v305_v54 = vpop.f32.mrf.mxu1 }
 0x3b6   :  { %v314_v55 = vsub.f32 %v305_v54, %v1182_v1  ;;  %v317_v56 = vmul.f32 %v315_v53, %v315_v53 }
 0x3b8   :  { %v321_v57 = vsel %vm119_vm1, %v317_v56, 0.0  ;;  %v316_v58 = vmul.f32 %v314_v55, %v314_v55 }
 0x3b9   :  { %322 = vadd.xlane.f32.xlu0 %v321_v57  ;;  %v383_v57 = vld [vmem:[#allocation2 + $0x40] sm:$0xff] }
 0x3ba   :  { %v318_v59 = vsel %vm119_vm1, %v316_v58, 0.0 }
 0x3bb   :  { %319 = vadd.xlane.f32.xlu1 %v318_v59 }
 0x442   :  { %v323_v62 = vpop.xlane.xlu0 %322 }
 0x443   :  { %v325_v63 = vadd.f32 1e-30, %v323_v62 }
 0x444   :  { %v320_v2 = vpop.xlane.xlu1 %319 }
 0x445   :  { %1085 = vrsqrt.f32 %v325_v63  ;;  %v324_v3 = vadd.f32 1e-30, %v320_v2 }
 0x447   :  { %1087 = vrsqrt.f32 %v324_v3  ;;  %v396_v3 = vld [vmem:[#allocation2 + $0x48] sm:$0xff] }
 0x452   :  { %v1086_v4 = vpop.eup %1085 }
 0x453   :  { %v329_v5 = vmul.f32 0.5, %v1086_v4 }
 0x454   :  { %v1088_v6 = vpop.eup %1087 }
 0x455   :  { %v331_v7 = vsub.f32 1.0, %v329_v5  ;;  %v328_v8 = vmul.f32 0.5, %v1088_v6  ;;  %v411_v5 = vld [vmem:[#allocation2 + $0x60] sm:$0xff] }
 0x457   :  { %v333_v9 = vmax.f32 %v331_v7, 0.0  ;;  %v330_v11 = vsub.f32 1.0, %v328_v8 }
 0x459   :  { %v335_v10 = vmul.f32 %v333_v9, %v315_v53  ;;  %v332_v13 = vmax.f32 %v330_v11, 0.0 }
 0x45b   :  { %v337_v12 = vadd.f32 %v335_v10, %v1177_v0  ;;  %v334_v14 = vmul.f32 %v332_v13, %v314_v55  ;;  %v1146_v0 = vmov 7   ;;  %v410_v10 = vld [vmem:[#allocation2 + $0x58] sm:$0xff] }
 0x45d   :  { %347 = vperm.xlu0 %1061, %v337_v12   ;;  %361 = vperm.xlu1 %1062, %v337_v12   ;;  %v336_v17 = vadd.f32 %v334_v14, %v1182_v1  ;;  %v1148_v1 = vmov 0.0   ;;  %v424_v14 = vld [vmem:[#allocation2 + $0x68] sm:$0xff] }
 0x45e   :  { %935 = vmatprep.subr.mxu1 %v1148_v1  ;;  %942 = vmatprep.subr.mxu0 %v1148_v1 }
 0x45f   :  { %939 = vmatprep.mubr.msk.f32.mxu1 %vm1149_vm2, %v1148_v1  ;;  %974 = vmatprep.mubr.msk.f32.mxu0 %vm1149_vm2, %v1148_v1 }
 0x460   :  { %943 = vmatpush3.msra.mxu0 %v547_v21  ;;  %v439_v21 = vld [vmem:[#allocation2 + $0x80] sm:$0xff] }
 0x461   :  { %1067 = vset.pattern.permute.xlu0 %v1142_v15  ;;  %1063 = vset.pattern.permute.xlu1 %v1143_v16 }
 0x462   :  { %431 = vperm.xlu0 %1067, %v337_v12   ;;  %375 = vperm.xlu1 %1063, %v337_v12  }
 0x463   :  { %944 = vmatprep.subr.mxu0 %v1148_v1 }
 0x464   :  { %945 = vmatpush3.msra.mxu0 %v546_v22 }
 0x465   :  { %946 = vmatprep.subr.mxu0 %v1148_v1 }
 0x466   :  { %1072 = vset.pattern.permute.xlu0 %v1144_v18  ;;  %1064 = vset.pattern.permute.xlu1 %v1145_v19 }
 0x467   :  { %389 = vperm.xlu1 %1064, %v337_v12   ;;  %399 = vperm.xlu0 %1072, %v336_v17  }
 0x468   :  { %947 = vmatpush3.msra.mxu0 %v545_v23 }
 0x469   :  { %948 = vmatprep.subr.mxu0 %v1148_v1 }
 0x46a   :  { %949 = vmatpush3.msra.mxu0 %v544_v24  ;;  %v438_v24 = vld [vmem:[#allocation2 + $0x78] sm:$0xff] }
 0x46b   :  { %1065 = vset.pattern.permute.xlu1 %v1144_v18  ;;  %1076 = vset.pattern.permute.xlu0 %v1146_v0 }
 0x46c   :  { %403 = vperm.xlu1 %1065, %v337_v12   ;;  %441 = vperm.xlu0 %1076, %v336_v17  }
 0x46d   :  { %950 = vmatprep.subr.mxu0 %v1148_v1 }
 0x46e   :  { %951 = vmatpush3.msra.mxu0 %v543_v25 }
 0x46f   :  { %952 = vmatprep.subr.mxu0 %v1148_v1 }
 0x470   :  { %1066 = vset.pattern.permute.xlu1 %v1147_v20  ;;  %953 = vmatpush3.msra.mxu0 %v542_v26 }
 0x471   :  { %417 = vperm.xlu1 %1066, %v337_v12   ;;  %954 = vmatprep.subr.mxu0 %v1148_v1 }
 0x472   :  { %955 = vmatpush3.msra.mxu0 %v541_v27 }
 0x473   :  { %956 = vmatprep.subr.mxu0 %v1148_v1 }
 0x474   :  { %957 = vmatpush3.msra.mxu0 %v540_v28 }
 0x475   :  { %1068 = vset.pattern.permute.xlu1 %v1141_v61  ;;  %958 = vmatprep.subr.mxu0 %v1148_v1  ;;  %v397_v61 = vld [vmem:[#allocation2 + $0x50] sm:$0xff] }
 0x476   :  { %342 = vperm.xlu1 %1068, %v336_v17   ;;  %959 = vmatpush3.msra.mxu0 %v539_v29 }
 0x477   :  { %960 = vmatprep.subr.mxu0 %v1148_v1 }
 0x478   :  { %961 = vmatpush3.msra.mxu0 %v538_v30 }
 0x479   :  { %962 = vmatprep.subr.mxu0 %v1148_v1 }
 0x47a   :  { %1069 = vset.pattern.permute.xlu1 %v1140_v60  ;;  %963 = vmatpush3.msra.mxu0 %v537_v31 }
 0x47b   :  { %357 = vperm.xlu1 %1069, %v336_v17   ;;  %964 = vmatprep.subr.mxu0 %v1148_v1 }
 0x47c   :  { %965 = vmatpush3.msra.mxu0 %v536_v32 }
 0x47d   :  { %966 = vmatprep.subr.mxu0 %v1148_v1 }
 0x47e   :  { %967 = vmatpush3.msra.mxu0 %v535_v33  ;;  %v452_v33 = vld [vmem:[#allocation2] sm:$0x3] }
 0x47f   :  { %1070 = vset.pattern.permute.xlu1 %v1143_v16  ;;  %968 = vmatprep.subr.mxu0 %v1148_v1 }
 0x480   :  { %371 = vperm.xlu1 %1070, %v336_v17  }
 0x484   :  { %1071 = vset.pattern.permute.xlu1 %v1145_v19  ;;  %v425_v19 = vld [vmem:[#allocation2 + $0x70] sm:$0xff] }
 0x485   :  { %385 = vperm.xlu1 %1071, %v336_v17  }
 0x489   :  { %1073 = vset.pattern.permute.xlu1 %v1147_v20 }
 0x48a   :  { %413 = vperm.xlu1 %1073, %v336_v17  }
 0x48e   :  { %1074 = vset.pattern.permute.xlu1 %v1142_v15 }
 0x48f   :  { %427 = vperm.xlu1 %1074, %v336_v17  }
 0x493   :  { %1075 = vset.pattern.permute.xlu1 %v1146_v0 }
 0x494   :  { %445 = vperm.xlu1 %1075, %v337_v12  }
 0x4d8   :  { %v362_v34 = vpop.permute.xlu1 %361  ;;  %v348_v41 = vpop.permute.xlu0 %347 }
 0x4d9   :  { %v351_v52 = vmul.f32 %v348_v41, %v339_v44  ;;  %v365_v53 = vmul.f32 %v362_v34, %v355_v45  ;;  %v534_v34 = vld [vmem:[#allocation2 + $0xa0] sm:$0xff]  ;;  %v635_v41 = vld [vmem:[#allocation2 + $0x170] sm:$0xff]  ;;  %v632_v44 = vld [vmem:[#allocation2 + $0x158] sm:$0xff] }
 0x4da   :  { %969 = vmatpush3.msra.mxu0 %v534_v34  ;;  %v631_v45 = vld [vmem:[#allocation2 + $0x150] sm:$0xff] }
 0x4db   :  { %v367_v62 = vadd.f32 %v365_v53, %v351_v52  ;;  %970 = vmatprep.subr.mxu0 %v1148_v1 }
 0x4dd   :  { %v376_v35 = vpop.permute.xlu1 %375  ;;  %v432_v49 = vpop.permute.xlu0 %431 }
 0x4de   :  { %v379_v58 = vmul.f32 %v376_v35, %v369_v50  ;;  %v435_v22 = vmul.f32 %v432_v49, %v425_v19  ;;  %v533_v35 = vld [vmem:[#allocation2 + $0x98] sm:$0xff]  ;;  %v627_v49 = vld [vmem:[#allocation2 + $0x130] sm:$0xff]  ;;  %v843_v50 = vld [vmem:[#allocation2 + $0x88] ss:$0 sm:$0xff] }
 0x4df   :  { %971 = vmatpush3.msra.mxu0 %v533_v35 }
 0x4e0   :  { %v381_v7 = vadd.f32 %v379_v58, %v367_v62  ;;  %972 = vmatprep.subr.mxu0 %v1148_v1  ;;  %v731_v58 = vld [vmem:[#allocation2 + $0x218] sm:$0xff] }
 0x4e1   :  { %v727_v62 = vld [vmem:[#allocation2 + $0x1f8] sm:$0xff] }
 0x4e2   :  { %v390_v36 = vpop.permute.xlu1 %389  ;;  %v400_v4 = vpop.permute.xlu0 %399 }
 0x4e3   :  { %v393_v63 = vmul.f32 %v390_v36, %v383_v57  ;;  %v406_v11 = vmul.f32 %v400_v4, %v396_v3  ;;  %v532_v36 = vld [vmem:[#allocation2 + $0x90] sm:$0xff]  ;;  %v624_v57 = vld [vmem:[#allocation2 + $0x118] sm:$0xff]  ;;  %v724_v3 = vld [vmem:[#allocation2 + $0x1e0] sm:$0xff] }
 0x4e4   :  { %973 = vmatpush3.msra.mxu0 %v532_v36  ;;  %v723_v4 = vld [vmem:[#allocation2 + $0x1d8] sm:$0xff] }
 0x4e5   :  { %v395_v12 = vadd.f32 %v393_v63, %v381_v7  ;;  %1012 = vmatprep.subr.mxu0 %v1148_v1  ;;  %v726_v63 = vld [vmem:[#allocation2 + $0x1f0] sm:$0xff]  ;;  %v720_v7 = vld [vmem:[#allocation2 + $0x1c0] sm:$0xff] }
 0x4e7   :  { %v404_v37 = vpop.permute.xlu1 %403  ;;  %v442_v25 = vpop.permute.xlu0 %441 }
 0x4e8   :  { %v407_v8 = vmul.f32 %v404_v37, %v397_v61  ;;  %v448_v30 = vmul.f32 %v442_v25, %v438_v24  ;;  %v639_v37 = vld [vmem:[#allocation2 + $0x190] sm:$0xff]  ;;  %v728_v61 = vld [vmem:[#allocation2 + $0x200] sm:$0xff] }
 0x4ea   :  { %v409_v15 = vadd.f32 %v407_v8, %v395_v12  ;;  %v719_v8 = vld [vmem:[#allocation2 + $0x1b8] sm:$0xff] }
 0x4ec   :  { %v418_v38 = vpop.permute.xlu1 %417 }
 0x4ed   :  { %v421_v13 = vmul.f32 %v418_v38, %v411_v5  ;;  %v638_v38 = vld [vmem:[#allocation2 + $0x188] sm:$0xff]  ;;  %v722_v5 = vld [vmem:[#allocation2 + $0x1d0] sm:$0xff] }
 0x4ef   :  { %v423_v0 = vadd.f32 %v421_v13, %v409_v15  ;;  %v717_v15 = vld [vmem:[#allocation2 + $0x1a8] sm:$0xff] }
 0x4f1   :  { %v343_v39 = vpop.permute.xlu1 %342  ;;  %v437_v28 = vadd.f32 %v435_v22, %v423_v0 }
 0x4f2   :  { %v350_v54 = vmul.f32 %v343_v39, %v338_v46  ;;  %v637_v39 = vld [vmem:[#allocation2 + $0x180] sm:$0xff]  ;;  %v630_v46 = vld [vmem:[#allocation2 + $0x148] sm:$0xff] }
 0x4f6   :  { %v358_v40 = vpop.permute.xlu1 %357 }
 0x4f7   :  { %v364_v48 = vmul.f32 %v358_v40, %v354_v42  ;;  %v636_v40 = vld [vmem:[#allocation2 + $0x178] sm:$0xff]  ;;  %v634_v42 = vld [vmem:[#allocation2 + $0x168] sm:$0xff] }
 0x4f9   :  { %v366_v59 = vadd.f32 %v364_v48, %v350_v54  ;;  %v628_v48 = vld [vmem:[#allocation2 + $0x138] sm:$0xff] }
 0x4fb   :  { %v372_v43 = vpop.permute.xlu1 %371 }
 0x4fc   :  { %v378_v55 = vmul.f32 %v372_v43, %v368_v47  ;;  %v633_v43 = vld [vmem:[#allocation2 + $0x160] sm:$0xff] }
 0x4fd   :  { %v629_v47 = vld [vmem:[#allocation2 + $0x140] sm:$0xff] }
 0x4fe   :  { %v380_v2 = vadd.f32 %v378_v55, %v366_v59  ;;  %v626_v55 = vld [vmem:[#allocation2 + $0x128] sm:$0xff]  ;;  %v730_v59 = vld [vmem:[#allocation2 + $0x210] sm:$0xff] }
 0x500   :  { %v386_v56 = vpop.permute.xlu1 %385 }
 0x501   :  { %v392_v60 = vmul.f32 %v386_v56, %v382_v51  ;;  %v625_v56 = vld [vmem:[#allocation2 + $0x120] sm:$0xff] }
 0x503   :  { %v394_v9 = vadd.f32 %v392_v60, %v380_v2  ;;  %v729_v60 = vld [vmem:[#allocation2 + $0x208] sm:$0xff] }
 0x504   :  { %v725_v2 = vld [vmem:[#allocation2 + $0x1e8] sm:$0xff] }
 0x505   :  { %v414_v6 = vpop.permute.xlu1 %413  ;;  %v408_v16 = vadd.f32 %v406_v11, %v394_v9  ;;  %v845_v9 = vld [vmem:[#allocation2 + $0x110] ss:$0 sm:$0xff] }
 0x506   :  { %v420_v17 = vmul.f32 %v414_v6, %v410_v10  ;;  %v721_v6 = vld [vmem:[#allocation2 + $0x1c8] sm:$0xff] }
 0x508   :  { %v422_v23 = vadd.f32 %v420_v17, %v408_v16  ;;  %v716_v16 = vld [vmem:[#allocation2 + $0x1a0] sm:$0xff]  ;;  %v846_v17 = vld [vmem:[#allocation2 + $0x198] ss:$0 sm:$0xff] }
 0x50a   :  { %v428_v18 = vpop.permute.xlu1 %427 }
 0x50b   :  { %v434_v20 = vmul.f32 %v428_v18, %v424_v14  ;;  %v718_v14 = vld [vmem:[#allocation2 + $0x1b0] sm:$0xff] }
 0x50d   :  { %v436_v27 = vadd.f32 %v434_v20, %v422_v23 }
 0x50f   :  { %v446_v26 = vpop.permute.xlu1 %445  ;;  %v450_v32 = vadd.f32 %v448_v30, %v436_v27 }
 0x510   :  { %v449_v29 = vmul.f32 %v446_v26, %v439_v21  ;;  %v847_v21 = vld [vmem:[#allocation2 + $0x220] ss:$0 sm:$0xff] }
 0x512   :  { %v451_v31 = vadd.f32 %v449_v29, %v437_v28 }
 0x514   :  { %936 = vmatpush3.msra.mxu1 %v451_v31 }
 0x515   :  { %937 = vmatprep.subr.mxu1 %v1148_v1 }
 0x516   :  { %938 = vmatpush3.msra.mxu1 %v450_v32 }
 0x517   :  { %940 = vmatmul.mubr.msk.f32.vlgmr.msra.gmra.mxu1 %vm33_vm0, %v452_v33  ;;  %977 = vmatprep.subr.mxu1 %v1148_v1 }
 0x518   :  { %1009 = vmatprep.mubr.msk.f32.mxu1 %vm1149_vm2, %v1148_v1  ;;  %978 = vmatpush3.msra.mxu1 %v639_v37 }
 0x519   :  { %979 = vmatprep.subr.mxu1 %v1148_v1 }
 0x51a   :  { %980 = vmatpush3.msra.mxu1 %v638_v38 }
 0x51b   :  { %981 = vmatprep.subr.mxu1 %v1148_v1 }
 0x51c   :  { %982 = vmatpush3.msra.mxu1 %v637_v39 }
 0x51d   :  { %983 = vmatprep.subr.mxu1 %v1148_v1 }
 0x51e   :  { %984 = vmatpush3.msra.mxu1 %v636_v40 }
 0x51f   :  { %985 = vmatprep.subr.mxu1 %v1148_v1 }
 0x520   :  { %986 = vmatpush3.msra.mxu1 %v635_v41 }
 0x521   :  { %987 = vmatprep.subr.mxu1 %v1148_v1 }
 0x522   :  { %988 = vmatpush3.msra.mxu1 %v634_v42 }
 0x523   :  { %989 = vmatprep.subr.mxu1 %v1148_v1 }
 0x524   :  { %990 = vmatpush3.msra.mxu1 %v633_v43 }
 0x525   :  { %991 = vmatprep.subr.mxu1 %v1148_v1 }
 0x526   :  { %992 = vmatpush3.msra.mxu1 %v632_v44 }
 0x527   :  { %993 = vmatprep.subr.mxu1 %v1148_v1 }
 0x528   :  { %994 = vmatpush3.msra.mxu1 %v631_v45 }
 0x529   :  { %995 = vmatprep.subr.mxu1 %v1148_v1 }
 0x52a   :  { %996 = vmatpush3.msra.mxu1 %v630_v46 }
 0x52b   :  { %997 = vmatprep.subr.mxu1 %v1148_v1 }
 0x52c   :  { %998 = vmatpush3.msra.mxu1 %v629_v47 }
 0x52d   :  { %999 = vmatprep.subr.mxu1 %v1148_v1 }
 0x52e   :  { %1000 = vmatpush3.msra.mxu1 %v628_v48 }
 0x52f   :  { %1001 = vmatprep.subr.mxu1 %v1148_v1 }
 0x530   :  { %1002 = vmatpush3.msra.mxu1 %v627_v49 }
 0x531   :  { %1003 = vmatprep.subr.mxu1 %v1148_v1 }
 0x532   :  { %1004 = vmatpush3.msra.mxu1 %v626_v55 }
 0x533   :  { %1005 = vmatprep.subr.mxu1 %v1148_v1 }
 0x534   :  { %1006 = vmatpush3.msra.mxu1 %v625_v56 }
 0x535   :  { %1007 = vmatprep.subr.mxu1 %v1148_v1 }
 0x536   :  { %1008 = vmatpush3.msra.mxu1 %v624_v57 }
 0x5d7   :  { %v527_v51 = vpop.f32.mrf.mxu1 }
 0x5d8   :  { %v528_v52 = vadd.f32 %v843_v50, %v527_v51 }
 0x5d9   :  { %v941_v53 = vpop.f32.mrf.mxu1 }
 0x5da   :  { %v531_v54 = vmax.f32 %v528_v52, 0.0 }
 0x5dc   :  { %975 = vmatmul.mubr.f32.vlgmr.msra.gmra.mxu0 %v531_v54 }
 0x5dd   :  { %1044 = vmatprep.mubr.msk.f32.mxu0 %vm1149_vm2, %v1148_v1  ;;  %1013 = vmatpush3.msra.mxu0 %v731_v58 }
 0x5de   :  { %1014 = vmatprep.subr.mxu0 %v1148_v1 }
 0x5df   :  { %1015 = vmatpush3.msra.mxu0 %v730_v59 }
 0x5e0   :  { %1016 = vmatprep.subr.mxu0 %v1148_v1 }
 0x5e1   :  { %1017 = vmatpush3.msra.mxu0 %v729_v60 }
 0x5e2   :  { %1018 = vmatprep.subr.mxu0 %v1148_v1 }
 0x5e3   :  { %1019 = vmatpush3.msra.mxu0 %v728_v61 }
 0x5e4   :  { %1020 = vmatprep.subr.mxu0 %v1148_v1 }
 0x5e5   :  { %1021 = vmatpush3.msra.mxu0 %v727_v62 }
 0x5e6   :  { %1022 = vmatprep.subr.mxu0 %v1148_v1 }
 0x5e7   :  { %1023 = vmatpush3.msra.mxu0 %v726_v63 }
 0x5e8   :  { %1024 = vmatprep.subr.mxu0 %v1148_v1 }
 0x5e9   :  { %1025 = vmatpush3.msra.mxu0 %v725_v2 }
 0x5ea   :  { %1026 = vmatprep.subr.mxu0 %v1148_v1 }
 0x5eb   :  { %1027 = vmatpush3.msra.mxu0 %v724_v3 }
 0x5ec   :  { %1028 = vmatprep.subr.mxu0 %v1148_v1 }
 0x5ed   :  { %1029 = vmatpush3.msra.mxu0 %v723_v4 }
 0x5ee   :  { %1030 = vmatprep.subr.mxu0 %v1148_v1 }
 0x5ef   :  { %1031 = vmatpush3.msra.mxu0 %v722_v5 }
 0x5f0   :  { %1032 = vmatprep.subr.mxu0 %v1148_v1 }
 0x5f1   :  { %1033 = vmatpush3.msra.mxu0 %v721_v6 }
 0x5f2   :  { %1034 = vmatprep.subr.mxu0 %v1148_v1 }
 0x5f3   :  { %1035 = vmatpush3.msra.mxu0 %v720_v7 }
 0x5f4   :  { %1036 = vmatprep.subr.mxu0 %v1148_v1 }
 0x5f5   :  { %1037 = vmatpush3.msra.mxu0 %v719_v8 }
 0x5f6   :  { %1038 = vmatprep.subr.mxu0 %v1148_v1 }
 0x5f7   :  { %1039 = vmatpush3.msra.mxu0 %v718_v14 }
 0x5f8   :  { %1040 = vmatprep.subr.mxu0 %v1148_v1 }
 0x5f9   :  { %1041 = vmatpush3.msra.mxu0 %v717_v15 }
 0x5fa   :  { %1042 = vmatprep.subr.mxu0 %v1148_v1 }
 0x5fb   :  { %1043 = vmatpush3.msra.mxu0 %v716_v16 }
 0x69c   :  { %v619_v10 = vpop.f32.mrf.mxu0 }
 0x69d   :  { %v620_v11 = vadd.f32 %v845_v9, %v619_v10 }
 0x69e   :  { %v976_v12 = vpop.f32.mrf.mxu0 }
 0x69f   :  { %v623_v13 = vmax.f32 %v620_v11, 0.0 }
 0x6a1   :  { %1010 = vmatmul.mubr.f32.vlgmr.msra.gmra.mxu1 %v623_v13 }
 0x761   :  { %v711_v18 = vpop.f32.mrf.mxu1 }
 0x762   :  { %v712_v19 = vadd.f32 %v846_v17, %v711_v18 }
 0x763   :  { %v1011_v0 = vpop.f32.mrf.mxu1 }
 0x764   :  { %v715_v20 = vmax.f32 %v712_v19, 0.0 }
 0x766   :  { %1045 = vmatmul.mubr.f32.vlgmr.msra.gmra.mxu0 %v715_v20 }
 0x826   :  { %v803_v22 = vpop.f32.mrf.mxu0 }
 0x827   :  { %v804_v23 = vadd.f32 %v847_v21, %v803_v22 }
 0x828   :  { %v1046_v24 = vpop.f32.mrf.mxu0 }
 0x829   :  { %v808_v25 = vsel %vm807_vm3, %v804_v23, -inf }
 0x82a   :  { %809 = vmax.xlane.f32.xlu1 %v808_v25 }
 0x8b3   :  { %v810_v26 = vpop.xlane.xlu1 %809 }
 0x8b4   :  { %v811_v27 = vsub.f32 %v804_v23, %v810_v26 }
 0x8b6   :  { %v812_v28 = vmul.f32 1.442695, %v811_v27 }
 0x8b8   :  { %1089 = vpow2.f32 %v812_v28 }
 0x8c5   :  { %v1090_v1 = vpop.eup %1089 }
 0x8c6   :  { %v814_v29 = vsel %vm807_vm3, %v1090_v1, 0.0 }
 0x8c7   :  { %815 = vadd.xlane.f32.xlu0 %v814_v29 }
 0x950   :  { %v816_v30 = vpop.xlane.xlu0 %815 }
 0x951   :  { %1091 = vlog2.f32 %v816_v30 }
 0x95e   :  { %v1092_v31 = vpop.eup %1091 }
 0x95f   :  { %v818_v32 = vmul.f32 0.6931472, %v1092_v31 }
 0x961   :  { %v819_v33 = vadd.f32 %v818_v32, %v810_v26 }
 0x963   :  { %v820_v34 = vsub.f32 %v804_v23, %v819_v33 }
 0x965   :  { %821 = vst [vmem:[#allocation5] sm:$0x3] %v820_v34 }
 0x966   :  { %1124 = shalt.err (!%p1121_p9)
}
 0x967   :  { %831 = dma.vmem_to_hbm [thread:$0]  %s829_s1, 32, %s1288_s3, [#allocation4]  }
 0x968   :  { %1135 = dma.done.wait [#allocation4], 32  }
 0x969   :  { %1136 = vsyncadd [#allocation4], 4294967264 }
 0x96a   :  { %835 = vsyncpa [#allocation3], 1 }
 0x96b   :  { %836 = vsyncpa [#allocation4], 1 }

</bundles_post_ra>
